<compile_context>
chip_gen: v5e
topology: v5e:2x2
jax: 0.10.0
libtpu: 0.0.40
codegen_flags: <defaults>
</compile_context>

<pallas_src>
import functools

import jax
import jax.numpy as jnp
from jax.experimental import pallas as pl
from jax.experimental.pallas import tpu as pltpu


def _fused_decoder_kernel(*refs, num_layers, act, sub_rows, n_sub):
    """refs = (x_ref, w0, b0, w1, b1, ..., w_{L-1}, b_{L-1}, o_ref).

    Chains all Linear+activation layers in-register.  Weights arrive already
    in the matmul dtype (bf16); the activation is cast to that dtype right
    before each dot, accumulation is f32, bias add + activation are f32.
    The batch rows of the tile are processed in `n_sub` statically-unrolled
    sub-blocks so independent MXU / EUP work can interleave.
    """
    x_ref = refs[0]
    o_ref = refs[-1]
    wb_refs = refs[1:-1]
    assert len(wb_refs) == 2 * num_layers

    for s in range(n_sub):
        r0 = s * sub_rows
        h = x_ref[pl.ds(r0, sub_rows), :].astype(jnp.float32)
        for layer in range(num_layers):
            w = wb_refs[2 * layer][...]            # bf16 (or matmul dtype)
            b = wb_refs[2 * layer + 1][...]        # f32
            acc = jnp.dot(h.astype(w.dtype), w,
                          preferred_element_type=jnp.float32)
            acc = acc + b.astype(jnp.float32)
            if act == "relu":
                h = jnp.maximum(acc, 0.0)
            elif act == "tanh":
                h = jnp.tanh(acc)
            else:
                raise ValueError(f"unsupported act_fn: {act}")
        o_ref[pl.ds(r0, sub_rows), :] = h.astype(o_ref.dtype)


def _round_up(n, m):
    return ((n + m - 1) // m) * m


def _pack_params(params, matmul_dtype):
    """Cast weights to the matmul dtype and zero-pad intermediate widths to
    128 lanes (outputs of layers 0..L-2 and the matching inputs of layers
    1..L-1).  The first layer's input width and the last layer's output width
    are left untouched.  Padding is pure zeros, so results are unchanged."""
    num_layers = len(params)
    packed = []
    prev_out_pad = None
    for i, (w, b) in enumerate(params):
        fin, fout = w.shape
        fin_p = fin if i == 0 else prev_out_pad
        fout_p = fout if i == num_layers - 1 else _round_up(fout, 128)
        wp = jnp.zeros((fin_p, fout_p), matmul_dtype)
        wp = wp.at[:fin, :fout].set(w.astype(matmul_dtype))
        bp = jnp.zeros((1, fout_p), jnp.float32)
        bp = bp.at[:, :fout].set(b.astype(jnp.float32).reshape(1, fout))
        packed.append((wp, bp))
        prev_out_pad = fout_p
    return packed


def decoder_forward(x, params, act_fn, *,
                    batch_tile=4096, min_tiled_batch=1024,
                    matmul_dtype=jnp.bfloat16):
    """Fused Decoder forward as a single Pallas TPU kernel.

    params: list of (W, b) with W shaped (in_features, out_features), applied
    in order.  Small batches run as one gridless call (everything in one VMEM
    block).  Large batches (B >= min_tiled_batch) tile the batch axis with at
    least 2 "parallel" grid steps so v7x's two TensorCores can split the work
    (harmless extra steps on single-TC v5e/v6e: ~0.35 us each).
    """
    B, H = x.shape
    num_layers = len(params)
    out_features = params[-1][0].shape[1]

    packed = _pack_params(params, matmul_dtype)
    flat_args = [x]
    for w, b in packed:
        flat_args.extend([w, b])

    # Advisory cost hint for XLA's scheduler around the custom call.
    flops = 2 * B * sum(w.shape[0] * w.shape[1] for w, _ in packed)
    transcendentals = (
        B * sum(w.shape[1] for w, _ in packed) if act_fn == "tanh" else 0
    )
    bytes_accessed = (
        sum(int(a.size) * a.dtype.itemsize for a in flat_args)
        + B * out_features * x.dtype.itemsize
    )
    cost = pl.CostEstimate(
        flops=flops, transcendentals=transcendentals, bytes_accessed=bytes_accessed
    )

    out_shape = jax.ShapeDtypeStruct((B, out_features), x.dtype)

    def make_kernel(tile_rows):
        # 2-way row sub-blocking only pays when there is EUP (tanh) work to
        # hide behind the next sub-block's matmul and the tile splits evenly.
        n_sub = 2 if (act_fn == "tanh" and tile_rows % 16 == 0 and tile_rows >= 16) else 1
        return functools.partial(
            _fused_decoder_kernel, num_layers=num_layers, act=act_fn,
            sub_rows=tile_rows // n_sub, n_sub=n_sub)

    if B < min_tiled_batch:
        # Gridless: x + a few tens of KB of weights as single VMEM blocks.
        # For tiny B this launch is pure fixed overhead; nothing to tune.
        in_specs = [pl.BlockSpec(x.shape, lambda: (0, 0))]
        for w, b in packed:
            in_specs.append(pl.BlockSpec(w.shape, lambda: (0, 0)))
            in_specs.append(pl.BlockSpec(b.shape, lambda: (0, 0)))
        return pl.pallas_call(
            make_kernel(B),
            out_shape=out_shape,
            in_specs=in_specs,
            out_specs=pl.BlockSpec((B, out_features), lambda: (0, 0)),
            cost_estimate=cost,
        )(*flat_args)

    # Batch-tiled path: at least 2 grid steps (so both v7x TCs get work),
    # capped at batch_tile rows per step; weights stay resident (index_map
    # returns the same block every step); only the lane-dense output is
    # written back to HBM.
    tb = min(_round_up(batch_tile, 16), _round_up(pl.cdiv(B, 2), 16))
    grid = (pl.cdiv(B, tb),)
    in_specs = [pl.BlockSpec((tb, H), lambda i: (i, 0))]
    for w, b in packed:
        in_specs.append(pl.BlockSpec(w.shape, lambda i: (0, 0)))
        in_specs.append(pl.BlockSpec(b.shape, lambda i: (0, 0)))
    return pl.pallas_call(
        make_kernel(tb),
        out_shape=out_shape,
        grid=grid,
        in_specs=in_specs,
        out_specs=pl.BlockSpec((tb, out_features), lambda i: (i, 0)),
        compiler_params=pltpu.CompilerParams(
            dimension_semantics=("parallel",)
        ),
        cost_estimate=cost,
    )(*flat_args)


def init_decoder_params(key, hidden_size, input_size, num_layers, dtype=jnp.float32):
    """Deterministically build the layer stack matching the PyTorch __init__.

    Returns a list of (W, b) with W shaped (in_features, out_features),
    ordered as applied in forward().
    """
    sizes = []  # built from the back, then the hidden->smallest layer in front
    cur = input_size
    for _ in range(num_layers - 1):
        sizes.insert(0, (cur // 2, cur))
        cur = cur // 2
    sizes.insert(0, (hidden_size, cur))

    params = []
    for fan_in, fan_out in sizes:
        key, kw, kb = jax.random.split(key, 3)
        bound = 1.0 / (fan_in ** 0.5)
        w = jax.random.uniform(kw, (fan_in, fan_out), dtype, minval=-bound, maxval=bound)
        b = jax.random.uniform(kb, (1, fan_out), dtype, minval=-bound, maxval=bound)
        params.append((w, b))
    return params


def decoder_forward_ref(x, params, act_fn):
    """Pure-JAX (f32) reference for correctness checking."""
    h = x
    for w, b in params:
        h = h @ w + b
        h = jnp.maximum(h, 0.0) if act_fn == "relu" else jnp.tanh(h)
    return h


if __name__ == "__main__":
    # Config consistent with the module:
    #   cfg.hidden_size = 32, input_size = 128, cfg.decoder_num_layers = 3,
    #   cfg.act_fn = 'relu'
    # Layer widths applied in forward: 32 -> 32 -> 64 -> 128 (act after each).
    hidden_size = 32
    input_size = 128
    num_layers = 3
    batch = 8

    key = jax.random.PRNGKey(0)
    key, kx = jax.random.split(key)
    x = jax.random.normal(kx, (batch, hidden_size), jnp.float32)
    params = init_decoder_params(key, hidden_size, input_size, num_layers)

    # Small-batch fused (gridless) path, ReLU.  Tolerances are loose because
    # matmul inputs are bf16 (f32 accumulation).
    out = decoder_forward(x, params, "relu")
    out = jax.block_until_ready(out)
    ref = decoder_forward_ref(x, params, "relu")
    assert out.shape == (batch, input_size), out.shape
    assert jnp.allclose(out, ref, atol=5e-2, rtol=5e-2), "relu mismatch vs reference"

    # Large-batch tiled (>=2 parallel grid steps) path, Tanh, exercising the
    # sub-blocked kernel and the other activation.
    big_batch = 1024
    key, kx2 = jax.random.split(key)
    xb = jax.random.normal(kx2, (big_batch, hidden_size), jnp.float32)
    out_b = decoder_forward(xb, params, "tanh")
    out_b = jax.block_until_ready(out_b)
    ref_b = decoder_forward_ref(xb, params, "tanh")
    assert out_b.shape == (big_batch, input_size), out_b.shape
    assert jnp.allclose(out_b, ref_b, atol=5e-2, rtol=5e-2), "tanh mismatch vs reference"

    print("KERNEL_OK")
</pallas_src>

<mosaic_0001>
module attributes {stable_mosaic.version = 11 : i64} {
  func.func @_fused_decoder_kernel(%arg0: memref<8x32xf32, #tpu.memory_space<vmem>>, %arg1: memref<32x128xbf16, #tpu.memory_space<vmem>>, %arg2: memref<1x128xf32, #tpu.memory_space<vmem>>, %arg3: memref<128x128xbf16, #tpu.memory_space<vmem>>, %arg4: memref<1x128xf32, #tpu.memory_space<vmem>>, %arg5: memref<128x128xbf16, #tpu.memory_space<vmem>>, %arg6: memref<1x128xf32, #tpu.memory_space<vmem>>, %arg7: memref<8x128xf32, #tpu.memory_space<vmem>>) attributes {dimension_semantics = [], scalar_prefetch = 0 : i64, scratch_operands = 0 : i64, tpu.core_type = #tpu.core_type<tc>} {
    %c0 = arith.constant 0 : index
    %c0_0 = arith.constant 0 : index
    %0 = vector.load %arg0[%c0, %c0_0] : memref<8x32xf32, #tpu.memory_space<vmem>>, vector<8x32xf32>
    %c0_1 = arith.constant 0 : index
    %c0_2 = arith.constant 0 : index
    %1 = vector.load %arg1[%c0_1, %c0_2] : memref<32x128xbf16, #tpu.memory_space<vmem>>, vector<32x128xbf16>
    %c0_3 = arith.constant 0 : index
    %c0_4 = arith.constant 0 : index
    %2 = vector.load %arg2[%c0_3, %c0_4] : memref<1x128xf32, #tpu.memory_space<vmem>>, vector<1x128xf32>
    %3 = arith.truncf %0 : vector<8x32xf32> to vector<8x32xbf16>
    %cst = arith.constant dense<0.000000e+00> : vector<8x128xf32>
    %4 = tpu.matmul %3, %1, %cst {dimension_numbers = #tpu.dot_dimension_numbers<[1], [0], [0], [1], [0, 0, 1, 1], [], []>} : vector<8x32xbf16>, vector<32x128xbf16>, vector<8x128xf32> -> vector<8x128xf32>
    %5 = vector.broadcast %2 : vector<1x128xf32> to vector<8x128xf32>
    %6 = arith.addf %4, %5 : vector<8x128xf32>
    %cst_5 = arith.constant 0.000000e+00 : f32
    %7 = vector.broadcast %cst_5 : f32 to vector<8x128xf32>
    %8 = arith.maximumf %6, %7 : vector<8x128xf32>
    %c0_6 = arith.constant 0 : index
    %c0_7 = arith.constant 0 : index
    %9 = vector.load %arg3[%c0_6, %c0_7] : memref<128x128xbf16, #tpu.memory_space<vmem>>, vector<128x128xbf16>
    %c0_8 = arith.constant 0 : index
    %c0_9 = arith.constant 0 : index
    %10 = vector.load %arg4[%c0_8, %c0_9] : memref<1x128xf32, #tpu.memory_space<vmem>>, vector<1x128xf32>
    %11 = arith.truncf %8 : vector<8x128xf32> to vector<8x128xbf16>
    %cst_10 = arith.constant dense<0.000000e+00> : vector<8x128xf32>
    %12 = tpu.matmul %11, %9, %cst_10 {dimension_numbers = #tpu.dot_dimension_numbers<[1], [0], [0], [1], [0, 0, 1, 1], [], []>} : vector<8x128xbf16>, vector<128x128xbf16>, vector<8x128xf32> -> vector<8x128xf32>
    %13 = vector.broadcast %10 : vector<1x128xf32> to vector<8x128xf32>
    %14 = arith.addf %12, %13 : vector<8x128xf32>
    %cst_11 = arith.constant 0.000000e+00 : f32
    %15 = vector.broadcast %cst_11 : f32 to vector<8x128xf32>
    %16 = arith.maximumf %14, %15 : vector<8x128xf32>
    %c0_12 = arith.constant 0 : index
    %c0_13 = arith.constant 0 : index
    %17 = vector.load %arg5[%c0_12, %c0_13] : memref<128x128xbf16, #tpu.memory_space<vmem>>, vector<128x128xbf16>
    %c0_14 = arith.constant 0 : index
    %c0_15 = arith.constant 0 : index
    %18 = vector.load %arg6[%c0_14, %c0_15] : memref<1x128xf32, #tpu.memory_space<vmem>>, vector<1x128xf32>
    %19 = arith.truncf %16 : vector<8x128xf32> to vector<8x128xbf16>
    %cst_16 = arith.constant dense<0.000000e+00> : vector<8x128xf32>
    %20 = tpu.matmul %19, %17, %cst_16 {dimension_numbers = #tpu.dot_dimension_numbers<[1], [0], [0], [1], [0, 0, 1, 1], [], []>} : vector<8x128xbf16>, vector<128x128xbf16>, vector<8x128xf32> -> vector<8x128xf32>
    %21 = vector.broadcast %18 : vector<1x128xf32> to vector<8x128xf32>
    %22 = arith.addf %20, %21 : vector<8x128xf32>
    %cst_17 = arith.constant 0.000000e+00 : f32
    %23 = vector.broadcast %cst_17 : f32 to vector<8x128xf32>
    %24 = arith.maximumf %22, %23 : vector<8x128xf32>
    %c0_18 = arith.constant 0 : index
    %c0_19 = arith.constant 0 : index
    %25 = vector.load %arg7[%c0_18, %c0_19] : memref<8x128xf32, #tpu.memory_space<vmem>>, vector<8x128xf32>
    tpu.vector_store %arg7[%c0_18, %c0_19], %24 {strides = array<i32>} : memref<8x128xf32, #tpu.memory_space<vmem>>, vector<8x128xf32>,
    return
  }
}

</mosaic_0001>

<bundles_post_ra>
// kernel: tpu_custom_call.1
= control target key start
LH: loop header
LB: loop body
LE: loop exit
PB: predicated region body
PF: predicated region fallthrough
CT: control target
= control target key end

     0   :  { %12 = vsyncpa [#allocation3], 0  ;;  %s615_s0 = inlined_call_operand.hbm [shape: f32[8,32], index: 0, kind: input, shape index: {}]   ;;  %s616_s1 = inlined_call_operand.hbm [shape: bf16[32,128], index: 1, kind: input, shape index: {}]   ;;  %s617_s2 = inlined_call_operand.vmem [shape: f32[1,128], index: 2, kind: input, shape index: {}]   ;;  %s618_s3 = inlined_call_operand.hbm [shape: bf16[128,128], index: 3, kind: input, shape index: {}]   ;;  %s619_s4 = inlined_call_operand.vmem [shape: f32[1,128], index: 4, kind: input, shape index: {}]   ;;  %s620_s5 = inlined_call_operand.hbm [shape: bf16[128,128], index: 5, kind: input, shape index: {}]   ;;  %s621_s6 = inlined_call_operand.vmem [shape: f32[1,128], index: 6, kind: input, shape index: {}]   ;;  %s622_s7 = inlined_call_operand.hbm [shape: f32[8,128], index: 7, kind: output, shape index: {}]  }
   0x1   :  { %13 = vsyncpa [#allocation6], 0 }
   0x2   :  { %14 = vsyncpa [#allocation9], 0  ;;  %s31_s26 = sshll.u32 %s616_s1, 4  ;;  %s32_s26 = int_to_ptr.hbm [resolvable:$true] %s31_s26 }
   0x3   :  { %15 = vsyncpa [#allocation4], 0  ;;  %s544_s27 = smov [#allocation5]   ;;  %s21_s8 = sshll.u32 %s615_s0, 4  ;;  %s22_s8 = int_to_ptr.hbm [resolvable:$true] %s21_s8 }
   0x4   :  { %s33_s28 = sshll.u32 %s544_s27, 4  ;;  %s545_s9 = smov 64   ;;  %s34_s28 = int_to_ptr.vmem [resolvable:$true] %s33_s28 }
   0x5   :  { %s546_s10 = smov 4   ;;  %s547_s11 = smov [#allocation2]  }
   0x6   :  { %39 = dma.hbm_to_vmem [thread:$0]  %s32_s26, 256, %s34_s28, [#allocation6], %s545_s9, %s545_s9, %s546_s10  }
   0x7   :  { %s23_s12 = sshll.u32 %s547_s11, 4  ;;  %s46_s15 = sshll.u32 %s618_s3, 4  ;;  %s24_s12 = int_to_ptr.vmem [resolvable:$true] %s23_s12  ;;  %s47_s15 = int_to_ptr.hbm [resolvable:$true] %s46_s15 }
   0x8   :  { %26 = dma.hbm_to_vmem [thread:$0]  %s22_s8, 128, %s24_s12, [#allocation3]  }
   0x9   :  { %s61_s17 = sshll.u32 %s620_s5, 4  ;;  %s548_s18 = smov [#allocation7]   ;;  %s62_s17 = int_to_ptr.hbm [resolvable:$true] %s61_s17 }
   0xa   :  { %s48_s19 = sshll.u32 %s548_s18, 4  ;;  %s549_s0 = smov [#allocation8]   ;;  %s49_s19 = int_to_ptr.vmem [resolvable:$true] %s48_s19 }
   0xb   :  { %54 = dma.hbm_to_vmem [thread:$0]  %s47_s15, 1024, %s49_s19, [#allocation6], %s545_s9, %s545_s9, %s546_s10  }
   0xc   :  { %s63_s20 = sshll.u32 %s549_s0, 4  ;;  %s64_s20 = int_to_ptr.vmem [resolvable:$true] %s63_s20 }
   0xd   :  { %69 = dma.hbm_to_vmem [thread:$0]  %s62_s17, 1024, %s64_s20, [#allocation9], %s545_s9, %s545_s9, %s546_s10  }
   0xe   :  { %536 = dma.done.wait [#allocation3], 128  }
   0xf   :  { %537 = vsyncadd [#allocation3], 4294967168 }
  0x10   :  { %538 = dma.done.wait [#allocation6], 1280  }
  0x11   :  { %539 = vsyncadd [#allocation6], 4294966016 }
  0x12   :  { %540 = dma.done.wait [#allocation9], 1024  }
  0x13   :  { %541 = vsyncadd [#allocation9], 4294966272  ;;  %v389_v0 = vld [vmem:[#allocation5 + $0x8] sm:$0xff]  ;;  %v388_v2 = vld [vmem:[#allocation5] sm:$0xff]  ;;  %vm111_vm0 = vcmask 261120   ;;  %s550_s24 = smov [#allocation10]  }
  0x14   :  { %v397_v1 = vld [vmem:[#allocation7 + $0x38] sm:$0xff]  ;;  %121 = vmatpush.bf16.msra.mxu0 %v389_v0  ;;  %v89_v3 = vld [vmem:[#allocation2] sm:$0xff]  ;;  %v396_v4 = vld [vmem:[#allocation7 + $0x30] sm:$0xff]  ;;  %s301_s25 = sshll.u32 %s550_s24, 4  ;;  %s303_s28 = sshll.u32 %s622_s7, 4  ;;  %s302_s25 = int_to_ptr.vmem [resolvable:$true] %s301_s25  ;;  %s304_s28 = int_to_ptr.hbm [resolvable:$true] %s303_s28 }
  0x15   :  { %198 = vmatpush.bf16.msra.mxu1 %v397_v1  ;;  %v95_v5 = vpack.c.bf16 %v89_v3, %v89_v3  ;;  %v395_v6 = vld [vmem:[#allocation7 + $0x28] sm:$0xff]  ;;  %v394_v7 = vld [vmem:[#allocation7 + $0x20] sm:$0xff]  ;;  %v393_v8 = vld [vmem:[#allocation7 + $0x18] sm:$0xff] }
  0x16   :  { %v392_v9 = vld [vmem:[#allocation7 + $0x10] sm:$0xff]  ;;  %v391_v10 = vld [vmem:[#allocation7 + $0x8] sm:$0xff]  ;;  %v390_v11 = vld [vmem:[#allocation7] sm:$0xff] }
  0x17   :  { %v405_v12 = vld [vmem:[#allocation8 + $0x38] sm:$0xff]  ;;  %v404_v13 = vld [vmem:[#allocation8 + $0x30] sm:$0xff]  ;;  %v403_v14 = vld [vmem:[#allocation8 + $0x28] sm:$0xff] }
  0x18   :  { %122 = vmatpush.bf16.msra.mxu0 %v388_v2  ;;  %281 = vmatpush.bf16.msra.mxu2 %v405_v12  ;;  %v402_v15 = vld [vmem:[#allocation8 + $0x20] sm:$0xff]  ;;  %v401_v16 = vld [vmem:[#allocation8 + $0x18] sm:$0xff]  ;;  %v400_v17 = vld [vmem:[#allocation8 + $0x10] sm:$0xff] }
  0x19   :  { %199 = vmatpush.bf16.msra.mxu1 %v396_v4  ;;  %v413_v18 = vld [vmem:[%s617_s2] ss:$0 sm:$0xff]  ;;  %v398_v25 = vld [vmem:[#allocation8] sm:$0xff] }
  0x1a   :  { %v399_v24 = vld [vmem:[#allocation8 + $0x8] sm:$0xff] }
  0x1b   :  { %323 = vmatmul.msk.bf16.vlgmr.msra.gmra.mxu0 %vm111_vm0, %v95_v5  ;;  %v414_v26 = vld [vmem:[%s619_s4] ss:$0 sm:$0xff] }
  0x1c   :  { %282 = vmatpush.bf16.msra.mxu2 %v404_v13  ;;  %v415_v32 = vld [vmem:[%s621_s6] ss:$0 sm:$0xff] }
  0x1d   :  { %200 = vmatpush.bf16.msra.mxu1 %v395_v6 }
  0x20   :  { %283 = vmatpush.bf16.msra.mxu2 %v403_v14 }
  0x21   :  { %201 = vmatpush.bf16.msra.mxu1 %v394_v7 }
  0x24   :  { %284 = vmatpush.bf16.msra.mxu2 %v402_v15 }
  0x25   :  { %202 = vmatpush.bf16.msra.mxu1 %v393_v8 }
  0x28   :  { %285 = vmatpush.bf16.msra.mxu2 %v401_v16 }
  0x29   :  { %203 = vmatpush.bf16.msra.mxu1 %v392_v9 }
  0x2c   :  { %286 = vmatpush.bf16.msra.mxu2 %v400_v17 }
  0x2d   :  { %204 = vmatpush.bf16.msra.mxu1 %v391_v10 }
  0x30   :  { %287 = vmatpush.bf16.msra.mxu2 %v399_v24 }
  0x31   :  { %205 = vmatpush.bf16.msra.mxu1 %v390_v11 }
  0x34   :  { %288 = vmatpush.bf16.msra.mxu2 %v398_v25 }
  0x98   :  { %v124_v19 = vpop.f32.mrf.mxu0 }
  0x99   :  { %v125_v20 = vadd.f32 %v413_v18, %v124_v19 }
  0x9b   :  { %v128_v21 = vmax.f32 %v125_v20, 0.0 }
  0x9d   :  { %v146_v22 = vpack.c.bf16 %v128_v21, %v128_v21 }
  0x9f   :  { %206 = vmatmul.bf16.vlgmr.msra.gmra.mxu1 %v146_v22 }
  0xa0   :  { %v126_v23 = vpop.f32.mrf.mxu0 }
 0x11c   :  { %v207_v27 = vpop.f32.mrf.mxu1 }
 0x11d   :  { %v208_v28 = vadd.f32 %v414_v26, %v207_v27 }
 0x11f   :  { %v211_v29 = vmax.f32 %v208_v28, 0.0 }
 0x121   :  { %v229_v30 = vpack.c.bf16 %v211_v29, %v211_v29 }
 0x123   :  { %289 = vmatmul.bf16.vlgmr.msra.gmra.mxu2 %v229_v30 }
 0x124   :  { %v209_v31 = vpop.f32.mrf.mxu1 }
 0x1a6   :  { %v290_v33 = vpop.f32.mrf.mxu2 }
 0x1a7   :  { %v291_v34 = vadd.f32 %v415_v32, %v290_v33 }
 0x1a9   :  { %v294_v35 = vmax.f32 %v291_v34, 0.0 }
 0x1ab   :  { %295 = vst [vmem:[#allocation10] sm:$0xff] %v294_v35 }
 0x1ac   :  { %306 = dma.vmem_to_hbm [thread:$0]  %s302_s25, 128, %s304_s28, [#allocation4]  }
 0x1ae   :  { %v292_v36 = vpop.f32.mrf.mxu2 }
 0x1af   :  { %542 = dma.done.wait [#allocation4], 128  }
 0x1b0   :  { %543 = vsyncadd [#allocation4], 4294967168 }
 0x1b1   :  { %311 = vsyncpa [#allocation3], 1 }
 0x1b2   :  { %312 = vsyncpa [#allocation6], 1 }
 0x1b3   :  { %313 = vsyncpa [#allocation9], 1 }
 0x1b4   :  { %314 = vsyncpa [#allocation4], 1 }

</bundles_post_ra>
